<compile_context>
chip_gen: v6e
topology: v6e:2x2x1
jax: 0.10.0
libtpu: 0.0.40
codegen_flags: <defaults>
</compile_context>

<pallas_src>
import functools

import jax
import jax.numpy as jnp
from jax.experimental import pallas as pl
from jax.experimental.pallas import tpu as pltpu


MIN_KERNEL_ELEMS = 256 * 1024   # ~1 MiB fp32: below this, plain jnp (XLA) wins
MIN_GRID_STEPS = 8              # keep the DMA pipeline (and both v7x TCs) busy


def _round_up(x, m):
    return (x + m - 1) // m * m


@functools.lru_cache(maxsize=None)
def _tpu_tile_config():
    """Returns (tile_bytes, vmem_limit_bytes), tuned per TPU generation."""
    is_v7x = False
    try:
        is_v7x = "7" in jax.devices()[0].device_kind.lower()
    except Exception:
        pass
    if is_v7x:
        # ~3.2 TB/s per TC: bigger tiles amortize the ~0.35us per-step overhead;
        # keep scoped VMEM <= ~48 MiB (v7x has only 64 MiB physical per TC).
        return 4 * 1024 * 1024, 48 * 1024 * 1024
    # v5e / v6e: 2 MiB tiles already sit at ~85% of HBM roofline; 32 MiB scoped
    # limit clears v5e's 16 MiB default while leaving plenty of headroom.
    return 2 * 1024 * 1024, 32 * 1024 * 1024


def _pick_lane(total):
    """Largest lane-dense width (multiple of 128) dividing `total`, prefer >=8 rows."""
    candidates = (512, 384, 256, 128)
    for cand in candidates:
        if total % cand == 0 and total // cand >= 8:
            return cand
    for cand in candidates:
        if total % cand == 0:
            return cand
    return None  # unreachable: caller guarantees total % 128 == 0


def _rezero_kernel(rw_ref, x1_ref, x2_ref, o_ref):
    # rw_ref: (1, 1) fp32 scalar in SMEM; x1/x2/o: (tr, lane) VMEM tiles.
    rw = rw_ref[0, 0]
    x1 = x1_ref[...].astype(jnp.float32)
    x2 = x2_ref[...].astype(jnp.float32)
    o_ref[...] = (x1 + rw * x2).astype(o_ref.dtype)


def rezero(x1, x2, resweight, *, out_dtype=None, min_kernel_elems=MIN_KERNEL_ELEMS):
    """ReZero forward: x1 + resweight * x2 (resweight: scalar fp32 nn.Parameter).

    out_dtype=None follows PyTorch promotion (bf16 activations + fp32 parameter
    -> fp32 output). Pass e.g. out_dtype=jnp.bfloat16 for an opt-in low-precision
    writeback (saves ~25% HBM traffic; intentionally diverges from PyTorch).
    """
    assert x1.shape == x2.shape, "ReZero expects matching residual shapes"
    orig_shape = x1.shape
    total = x1.size

    # PyTorch-style promotion (also tolerates mixed fp32/bf16 residual pairs).
    promoted = jnp.promote_types(jnp.promote_types(x1.dtype, x2.dtype), jnp.float32)
    if out_dtype is None:
        out_dtype = promoted

    rw = jnp.asarray(resweight, dtype=jnp.float32).reshape(())

    def _jnp_path(a, b):
        return (a.astype(jnp.float32) + rw * b.astype(jnp.float32)).astype(out_dtype)

    # Deliberate fallbacks (see header): tiny inputs and ragged flat sizes.
    if total < min_kernel_elems or total % 128 != 0:
        return _jnp_path(x1, x2)

    lane = _pick_lane(total)
    rows = total // lane
    x1_2d = x1.reshape(rows, lane)   # contiguous reshape: no HBM copy
    x2_2d = x2.reshape(rows, lane)

    tile_bytes, vmem_limit = _tpu_tile_config()
    tile_rows_cap = max(8, tile_bytes // (lane * 4))   # tiles sized for fp32

    # Aim for >= MIN_GRID_STEPS grid steps so input DMA / compute / writeback
    # overlap, and so v7x's two TensorCores both get work on the parallel axis.
    tr = _round_up(pl.cdiv(rows, MIN_GRID_STEPS), 8)
    tr = max(8, min(tr, tile_rows_cap, _round_up(rows, 8)))
    grid = (pl.cdiv(rows, tr),)

    out_2d = pl.pallas_call(
        _rezero_kernel,
        out_shape=jax.ShapeDtypeStruct((rows, lane), out_dtype),
        grid=grid,
        in_specs=[
            pl.BlockSpec(memory_space=pltpu.SMEM),        # resweight scalar
            pl.BlockSpec((tr, lane), lambda i: (i, 0)),   # x1 tile
            pl.BlockSpec((tr, lane), lambda i: (i, 0)),   # x2 tile
        ],
        out_specs=pl.BlockSpec((tr, lane), lambda i: (i, 0)),
        compiler_params=pltpu.CompilerParams(
            dimension_semantics=("parallel",),            # shards across v7x's 2 TCs
            vmem_limit_bytes=vmem_limit,
        ),
    )(rw.reshape(1, 1), x1_2d, x2_2d)

    return out_2d.reshape(orig_shape)


if __name__ == "__main__":
    key = jax.random.PRNGKey(0)
    k1, k2, k3, k4, k5, k6 = jax.random.split(key, 6)

    # nn.Parameter(torch.Tensor([0.0])) -> deterministic init at 0.0.
    resweight_init = jnp.float32(0.0)
    resweight = jnp.float32(0.37)

    # 1) Small NCHW input, forced through the Pallas kernel (min_kernel_elems=0).
    x1 = jax.random.normal(k1, (2, 4, 16, 16), dtype=jnp.float32)
    x2 = jax.random.normal(k2, (2, 4, 16, 16), dtype=jnp.float32)
    out = jax.block_until_ready(rezero(x1, x2, resweight_init, min_kernel_elems=0))
    assert jnp.allclose(out, x1 + resweight_init * x2, atol=1e-6), "kernel mismatch @0.0"
    out = jax.block_until_ready(rezero(x1, x2, resweight, min_kernel_elems=0))
    assert jnp.allclose(out, x1 + resweight * x2, atol=1e-6), "kernel mismatch @0.37"

    # 2) Same small input through the default path (small-input jnp fallback).
    out = jax.block_until_ready(rezero(x1, x2, resweight))
    assert jnp.allclose(out, x1 + resweight * x2, atol=1e-6), "small-fallback mismatch"

    # 3) Ragged flat size (not a multiple of 128) -> jnp fallback path.
    y1 = jax.random.normal(k3, (3, 5, 7, 11), dtype=jnp.float32)
    y2 = jax.random.normal(k4, (3, 5, 7, 11), dtype=jnp.float32)
    out = jax.block_until_ready(rezero(y1, y2, resweight))
    assert jnp.allclose(out, y1 + resweight * y2, atol=1e-6), "ragged-fallback mismatch"

    # 4) Mid-size input exercising a multi-step pipelined grid in the kernel.
    z1 = jax.random.normal(k5, (8, 16, 64, 128), dtype=jnp.float32)   # 4 MiB / array
    z2 = jax.random.normal(k6, (8, 16, 64, 128), dtype=jnp.float32)
    out = jax.block_until_ready(rezero(z1, z2, resweight))
    assert jnp.allclose(out, z1 + resweight * z2, atol=1e-6), "gridded-kernel mismatch"

    # 5) bf16 activations: default follows PyTorch promotion (fp32 output);
    #    opt-in bf16 writeback saves ~25% HBM traffic.
    b1 = z1.astype(jnp.bfloat16)
    b2 = z2.astype(jnp.bfloat16)
    ref_b = b1.astype(jnp.float32) + resweight * b2.astype(jnp.float32)
    out = jax.block_until_ready(rezero(b1, b2, resweight))
    assert out.dtype == jnp.float32
    assert jnp.allclose(out, ref_b, atol=1e-5), "bf16->fp32 mismatch"
    out_bf = jax.block_until_ready(rezero(b1, b2, resweight, out_dtype=jnp.bfloat16))
    assert out_bf.dtype == jnp.bfloat16
    assert jnp.allclose(out_bf.astype(jnp.float32), ref_b, atol=3e-2, rtol=3e-2), \
        "bf16 writeback mismatch"

    print("KERNEL_OK")
</pallas_src>

<mosaic_0001>
module attributes {stable_mosaic.version = 11 : i64} {
  func.func @_rezero_kernel(%arg0: i32, %arg1: memref<1x1xf32, #tpu.memory_space<smem>>, %arg2: memref<8x256xf32, #tpu.memory_space<vmem>>, %arg3: memref<8x256xf32, #tpu.memory_space<vmem>>, %arg4: memref<8x256xf32, #tpu.memory_space<vmem>>) attributes {dimension_semantics = [#tpu.dimension_semantics<parallel>], iteration_bounds = array<i64: 1>, scalar_prefetch = 0 : i64, scratch_operands = 0 : i64, tpu.core_type = #tpu.core_type<tc>, window_params = [{transform_indices = @transform_0, window_bounds = array<i64: 1, 1>}, {transform_indices = @transform_1, window_bounds = array<i64: 8, 256>}, {transform_indices = @transform_2, window_bounds = array<i64: 8, 256>}, {transform_indices = @transform_3, window_bounds = array<i64: 8, 256>}]} {
    %c0 = arith.constant 0 : index
    %c0_0 = arith.constant 0 : index
    %0 = memref.load %arg1[%c0, %c0_0] : memref<1x1xf32, #tpu.memory_space<smem>>
    %c0_1 = arith.constant 0 : index
    %c0_2 = arith.constant 0 : index
    %1 = vector.load %arg2[%c0_1, %c0_2] : memref<8x256xf32, #tpu.memory_space<vmem>>, vector<8x256xf32>
    %c0_3 = arith.constant 0 : index
    %c0_4 = arith.constant 0 : index
    %2 = vector.load %arg3[%c0_3, %c0_4] : memref<8x256xf32, #tpu.memory_space<vmem>>, vector<8x256xf32>
    %3 = vector.broadcast %0 : f32 to vector<8x256xf32>
    %4 = arith.mulf %3, %2 : vector<8x256xf32>
    %5 = arith.addf %1, %4 : vector<8x256xf32>
    %c0_5 = arith.constant 0 : index
    %c0_6 = arith.constant 0 : index
    %6 = vector.load %arg4[%c0_5, %c0_6] : memref<8x256xf32, #tpu.memory_space<vmem>>, vector<8x256xf32>
    tpu.vector_store %arg4[%c0_5, %c0_6], %5 {strides = array<i32>} : memref<8x256xf32, #tpu.memory_space<vmem>>, vector<8x256xf32>,
    return
  }
  func.func @transform_0(%arg0: i32) -> (i32, i32) {
    %c0_i32 = arith.constant 0 : i32
    %c0_i32_0 = arith.constant 0 : i32
    %c0_i32_1 = arith.constant 0 : i32
    return %c0_i32, %c0_i32_0 : i32, i32
  }
  func.func @transform_1(%arg0: i32) -> (i32, i32) {
    %c0_i32 = arith.constant 0 : i32
    %c0_i32_0 = arith.constant 0 : i32
    return %arg0, %c0_i32 : i32, i32
  }
  func.func @transform_2(%arg0: i32) -> (i32, i32) {
    %c0_i32 = arith.constant 0 : i32
    %c0_i32_0 = arith.constant 0 : i32
    return %arg0, %c0_i32 : i32, i32
  }
  func.func @transform_3(%arg0: i32) -> (i32, i32) {
    %c0_i32 = arith.constant 0 : i32
    %c0_i32_0 = arith.constant 0 : i32
    return %arg0, %c0_i32 : i32, i32
  }
}

</mosaic_0001>

<bundles_post_ra>
// kernel: tpu_custom_call.1
= control target key start
LH: loop header
LB: loop body
LE: loop exit
PB: predicated region body
PF: predicated region fallthrough
CT: control target
= control target key end

     0   :  { %9 = vsyncpa [#allocation4], 0  ;;  %s172_s0 = inlined_call_operand.<no memory space> [shape: f32[1,1], index: 0, kind: input, shape index: {}]   ;;  %s173_s1 = inlined_call_operand.hbm [shape: f32[8,256], index: 1, kind: input, shape index: {}]   ;;  %s174_s2 = inlined_call_operand.hbm [shape: f32[8,256], index: 2, kind: input, shape index: {}]   ;;  %s175_s3 = inlined_call_operand.hbm [shape: f32[8,256], index: 3, kind: output, shape index: {}]  }
   0x1   :  { %10 = vsyncpa [#allocation7], 0 }
   0x2   :  { %11 = vsyncpa [#allocation5], 0  ;;  %s137_s12 = smov [#allocation3]   ;;  %s138_s14 = smov [#allocation6]  }
   0x3   :  { %s20_s13 = sshll.u32 %s137_s12, 4  ;;  %s30_s15 = sshll.u32 %s138_s14, 4  ;;  %s21_s13 = int_to_ptr.vmem [resolvable:$true] %s20_s13  ;;  %s31_s15 = int_to_ptr.vmem [resolvable:$true] %s30_s15 }
   0x4   :  { %s79_s16 = scalar_lea.vmem %s21_s13, 256  ;;  %p84_p1 = scmp.lt.s32.totalorder %s21_s13, %s21_s13 }
   0x5   :  { %p80_p0 = scmp.ne.s32.totalorder %s21_s13, %s79_s16  ;;  %p85_p2 = scmp.lt.s32.totalorder %s79_s16, %s79_s16 }
   0x7   :  { %p86_p3 = por %p85_p2, %p84_p1 }
   0x9   :  { %p87_p4 = pnand %p86_p3, %p80_p0 }
   0xb   :  { %90 = shalt.err (!%p87_p4)
}
   0xc   :  { %23 = dma.hbm_to_vmem [thread:$0]  %s173_s1, 256, %s21_s13, [#allocation4]  }
   0xd   :  { %s99_s19 = scalar_lea.vmem %s31_s15, 256  ;;  %p104_p6 = scmp.lt.s32.totalorder %s31_s15, %s31_s15 }
   0xe   :  { %p100_p5 = scmp.ne.s32.totalorder %s31_s15, %s99_s19  ;;  %p105_p7 = scmp.lt.s32.totalorder %s99_s19, %s99_s19 }
  0x10   :  { %p106_p8 = por %p105_p7, %p104_p6 }
  0x12   :  { %p107_p9 = pnand %p106_p8, %p100_p5 }
  0x14   :  { %110 = shalt.err (!%p107_p9)
}
  0x15   :  { %33 = dma.hbm_to_vmem [thread:$0]  %s174_s2, 256, %s31_s15, [#allocation7]  }
  0x16   :  { %131 = dma.done.wait [#allocation4], 256  }
  0x17   :  { %132 = vsyncadd [#allocation4], 4294967040 }
  0x18   :  { %133 = dma.done.wait [#allocation7], 256  }
  0x19   :  { %134 = vsyncadd [#allocation7], 4294967040  ;;  %v45_v0 = vstv %s172_s0  ;;  %v41_v1 = vld [vmem:[#allocation3] sm:$0xff]  ;;  %v43_v2 = vld [vmem:[#allocation6] sm:$0xff]  ;;  %s139_s1 = smov [#allocation8]  }
  0x1a   :  { %v46_v3 = vmul.f32 %v45_v0, %v43_v2  ;;  %v42_v4 = vld [vmem:[#allocation3 + $0x8] sm:$0xff]  ;;  %v44_v5 = vld [vmem:[#allocation6 + $0x8] sm:$0xff]  ;;  %s58_s24 = sshll.u32 %s139_s1, 4  ;;  %s59_s24 = int_to_ptr.vmem [resolvable:$true] %s58_s24 }
  0x1b   :  { %v47_v6 = vmul.f32 %v45_v0, %v44_v5  ;;  %s111_s2 = scalar_lea.vmem %s59_s24, 256  ;;  %p116_p11 = scmp.lt.s32.totalorder %s59_s24, %s59_s24 }
  0x1c   :  { %v48_v7 = vadd.f32 %v46_v3, %v41_v1  ;;  %p112_p10 = scmp.ne.s32.totalorder %s59_s24, %s111_s2  ;;  %p117_p12 = scmp.lt.s32.totalorder %s111_s2, %s111_s2 }
  0x1d   :  { %v49_v8 = vadd.f32 %v47_v6, %v42_v4 }
  0x1e   :  { %50 = vst [vmem:[#allocation8] sm:$0xff] %v48_v7  ;;  %p118_p13 = por %p117_p12, %p116_p11 }
  0x1f   :  { %51 = vst [vmem:[#allocation8 + $0x8] sm:$0xff] %v49_v8 }
  0x20   :  { %p119_p0 = pnand %p118_p13, %p112_p10 }
  0x22   :  { %122 = shalt.err (!%p119_p0)
}
  0x23   :  { %61 = dma.vmem_to_hbm [thread:$0]  %s59_s24, 256, %s175_s3, [#allocation5]  }
  0x24   :  { %135 = dma.done.wait [#allocation5], 256  }
  0x25   :  { %136 = vsyncadd [#allocation5], 4294967040 }
  0x26   :  { %65 = vsyncpa [#allocation4], 1 }
  0x27   :  { %66 = vsyncpa [#allocation7], 1 }
  0x28   :  { %67 = vsyncpa [#allocation5], 1 }

</bundles_post_ra>
